<compile_context>
chip_gen: v7x
topology: tpu7x:2x2x1
jax: 0.10.0
libtpu: 0.0.40
codegen_flags: <defaults>
</compile_context>

<pallas_src>
import jax
import jax.numpy as jnp
from jax.experimental import pallas as pl
from jax.experimental.pallas import tpu as pltpu

_LANE = 128


def _round_up(x, m):
    return ((x + m - 1) // m) * m


def _vmem_capacity_bytes():
    try:
        info = pltpu.get_tpu_info()
        cap = int(getattr(info, "vmem_capacity_bytes", 64 * 1024 * 1024))
    except Exception:
        cap = 64 * 1024 * 1024
    return max(cap, 32 * 1024 * 1024)


def _pick_row_tile(n_rows, per_row_bytes, full_dim_rows, align, cap, budget):
    """Largest row tile (multiple of `align`, <= cap) whose pipelined working
    set stays inside `budget`; when the whole extent fits one block, use a
    single (aligned if possible, else full-dim) block."""
    n_rows = max(int(n_rows), 1)
    per_row_bytes = max(int(per_row_bytes), 1)
    max_rows = max(align, (budget // per_row_bytes) // align * align)
    tile = min(int(cap), max_rows)
    tile = max(align, (tile // align) * align)
    if tile >= n_rows:
        t = _round_up(n_rows, align)
        tile = t if t <= full_dim_rows else full_dim_rows
    return tile


def _make_uda_kernel(*, tile_s, tile_u, num_labels, n_sup_tiles, n_unsup_tiles,
                     steps_per_part, num_parts, sup_rows, unsup_rows):
    L = num_labels

    def kernel(nlt_ref, sup_ref, labels_ref, tgt_ref, prd_ref, out_ref,
               ce_acc, sel_acc, kl_acc):
        part = pl.program_id(0)
        j = pl.program_id(1)
        # Interleave row tiles across partitions so both TensorCores (v7x) see
        # a similar mix of sup-only / unsup-only / gated steps.
        tile = j * num_parts + part

        @pl.when(j == 0)
        def _init():
            ce_acc[...] = jnp.zeros_like(ce_acc)
            sel_acc[...] = jnp.zeros_like(sel_acc)
            kl_acc[...] = jnp.zeros_like(kl_acc)

        # ---- supervised rows: CE + TSA row selection --------------------------
        @pl.when(tile < n_sup_tiles)
        def _sup():
            x = sup_ref[...].astype(jnp.float32)                   # (tile_s, L)
            m = jnp.max(x, axis=-1, keepdims=True)
            z = x - m
            s = jnp.sum(jnp.exp(z), axis=-1, keepdims=True)

            labels = labels_ref[...]                               # (tile_s, 1)
            cols = jax.lax.broadcasted_iota(jnp.int32, (tile_s, L), 1)
            onehot = (cols == labels).astype(jnp.float32)
            z_true = jnp.sum(z * onehot, axis=-1, keepdims=True)
            ce = jnp.log(s) - z_true                               # (tile_s, 1)

            rows = (jax.lax.broadcasted_iota(jnp.int32, (tile_s, 1), 0)
                    + tile * tile_s)
            valid = rows < sup_rows
            # true_prob < thresh  <=>  ce > -log(thresh)  (thresh<=0 -> never)
            sel = jnp.logical_and(ce > nlt_ref[0], valid)

            ce_acc[...] += jnp.where(sel, ce, 0.0)
            sel_acc[...] += jnp.where(sel, 1.0, 0.0)

        # ---- unsupervised rows: KL(softmax(tgt) || log_softmax(pred)) ---------
        @pl.when(tile < n_unsup_tiles)
        def _unsup():
            xt = tgt_ref[...].astype(jnp.float32)                  # (tile_u, L)
            xp = prd_ref[...].astype(jnp.float32)

            mt = jnp.max(xt, axis=-1, keepdims=True)
            mp = jnp.max(xp, axis=-1, keepdims=True)
            zt = xt - mt
            zp = xp - mp
            et = jnp.exp(zt)
            st = jnp.sum(et, axis=-1, keepdims=True)
            sp = jnp.sum(jnp.exp(zp), axis=-1, keepdims=True)
            cross = jnp.sum(et * (zt - zp), axis=-1, keepdims=True)
            # Factored, exact KL: no softmax / log-softmax tiles materialized.
            kl = cross / st + (jnp.log(sp) - jnp.log(st))          # (tile_u, 1)

            rows = (jax.lax.broadcasted_iota(jnp.int32, (tile_u, 1), 0)
                    + tile * tile_u)
            valid = rows < unsup_rows
            kl_acc[...] += jnp.where(valid, kl, 0.0)

        # ---- per-part finalize: reduce accumulator columns, write raw sums ----
        @pl.when(j == steps_per_part - 1)
        def _finalize():
            ce_sum = jnp.sum(ce_acc[...])
            n_sel = jnp.sum(sel_acc[...])
            kl_sum = jnp.sum(kl_acc[...])
            row = jax.lax.broadcasted_iota(jnp.int32, (8, _LANE), 0)
            packed = jnp.where(
                row == 0, ce_sum,
                jnp.where(row == 1, n_sel,
                          jnp.where(row == 2, kl_sum, 0.0)))
            out_ref[0] = packed.astype(jnp.float32)

    return kernel


def uda_loss(y_pred, y_true_sup, global_step, total_steps, tsa_schedule=None,
             start_p=0.0, end_p=1.0, return_all_loss=True, row_tile_cap=512):
    """JAX/Pallas equivalent of bert4torch UDALoss.forward.

    y_pred:     [btz_sup + 2*btz_unsup, num_labels], f32 / bf16 / f16
                (kept in its native dtype on the wire; upcast per tile)
    y_true_sup: [btz_sup] integer class ids
    """
    S = int(y_true_sup.shape[0])
    total_rows, L = int(y_pred.shape[0]), int(y_pred.shape[1])
    assert (total_rows - S) % 2 == 0, "y_pred rows must be sup + 2*unsup"
    U = (total_rows - S) // 2

    dtype = y_pred.dtype
    itemsize = jnp.dtype(dtype).itemsize
    align = 8 * max(1, 4 // itemsize)            # 8 rows (f32) / 16 rows (bf16, f16)

    # Generation-aware tile budget (128 MiB VMEM on v5e/v6e, 64 MiB on v7x).
    vmem_cap = _vmem_capacity_bytes()
    tile_budget = max(8 << 20, min(40 << 20, int(vmem_cap * 0.30)))
    per_stream_budget = tile_budget // 3

    # Per-row working-set estimates: 2 native-dtype buffers + f32 intermediates
    # (+ lane-padded label blocks on the sup stream).
    sup_row_bytes = L * (2 * itemsize + 3 * 4) + 2 * _LANE * 4
    uns_row_bytes = L * (2 * itemsize + 3 * 4)

    tile_s = _pick_row_tile(S, sup_row_bytes, total_rows, align,
                            row_tile_cap, per_stream_budget)
    U_eff = max(U, 1)
    tile_u = _pick_row_tile(U_eff, uns_row_bytes, U_eff, align,
                            row_tile_cap, per_stream_budget)

    n_s = -(-S // tile_s)
    n_u = -(-U_eff // tile_u)
    steps = max(n_s, n_u)
    num_parts = 2 if steps >= 2 else 1           # shard row tiles across 2 TCs (v7x)
    spp = (steps + num_parts - 1) // num_parts   # steps per partition

    # TSA threshold -> -log(threshold), computed once on the host (jnp so a
    # traced global_step works under jit).  threshold <= 0 -> select nothing.
    if tsa_schedule is None:
        nlt = jnp.full((1,), -1.0, dtype=jnp.float32)     # ce >= 0 > -1: all rows
    else:
        if tsa_schedule not in ("linear_schedule", "exp_schedule", "log_schedule"):
            raise ValueError("tsa_schedule config illegal")
        prog = (jnp.asarray(global_step, jnp.float32)
                / jnp.asarray(total_steps, jnp.float32))
        if tsa_schedule == "linear_schedule":
            t = prog
        elif tsa_schedule == "exp_schedule":
            t = jnp.exp((prog - 1.0) * 5.0)
        else:
            t = 1.0 - jnp.exp(-prog * 5.0)
        thresh = t * (end_p - start_p) + start_p
        nlt = jnp.where(thresh > 0.0,
                        -jnp.log(jnp.maximum(thresh, 1e-30)),
                        jnp.float32(3.0e38))
        nlt = jnp.reshape(nlt, (1,)).astype(jnp.float32)

    # Unsupervised half of y_pred as a (2, U, L) view (single residual copy);
    # passed twice so target / pred blocks are plain block-indexed windows.
    if U > 0:
        unsup3 = y_pred[S:].reshape(2, U, L)
    else:
        unsup3 = jnp.zeros((2, tile_u, L), dtype)

    # Labels ride as a tiny (n_s*tile_s, 1) int32 column: the one-hot compare
    # needs them broadcast in vector registers anyway.
    labels = jnp.zeros((n_s * tile_s, 1), jnp.int32).at[:S, 0].set(
        y_true_sup.astype(jnp.int32))

    kernel = _make_uda_kernel(
        tile_s=tile_s, tile_u=tile_u, num_labels=L,
        n_sup_tiles=n_s, n_unsup_tiles=n_u,
        steps_per_part=spp, num_parts=num_parts,
        sup_rows=S, unsup_rows=U)

    def sup_map(part, j):
        return (jnp.minimum(j * num_parts + part, n_s - 1), 0)

    def tgt_map(part, j):
        return (0, jnp.minimum(j * num_parts + part, n_u - 1), 0)

    def prd_map(part, j):
        return (1, jnp.minimum(j * num_parts + part, n_u - 1), 0)

    # vmem_limit consistent with what the tiles actually use (+ headroom),
    # capped well below physical VMEM on every generation.
    est = (2 * (tile_s + 2 * tile_u) * L * itemsize
           + (3 * tile_s + 5 * tile_u) * L * 4
           + 2 * tile_s * _LANE * 4
           + 4 * (tile_s + tile_u) * 4 + 2 * 8 * _LANE * 4)
    vmem_limit = int(min(0.6 * vmem_cap, max(32 << 20, est + (8 << 20))))
    vmem_limit = max(vmem_limit, est + (2 << 20))

    out = pl.pallas_call(
        kernel,
        out_shape=jax.ShapeDtypeStruct((num_parts, 8, _LANE), jnp.float32),
        grid_spec=pltpu.PrefetchScalarGridSpec(
            num_scalar_prefetch=0,
            grid=(num_parts, spp),
            in_specs=[
                pl.BlockSpec(memory_space=pltpu.MemorySpace.SMEM),  # -log(thresh)
                pl.BlockSpec((tile_s, L), sup_map),                 # y_pred (sup rows)
                pl.BlockSpec((tile_s, 1), sup_map),                 # labels
                pl.BlockSpec((None, tile_u, L), tgt_map),           # unsup targets
                pl.BlockSpec((None, tile_u, L), prd_map),           # unsup preds
            ],
            out_specs=pl.BlockSpec((1, 8, _LANE), lambda part, j: (part, 0, 0)),
            scratch_shapes=[pltpu.VMEM((tile_s, 1), jnp.float32),   # sum sel CE
                            pltpu.VMEM((tile_s, 1), jnp.float32),   # count sel
                            pltpu.VMEM((tile_u, 1), jnp.float32)],  # sum KL
        ),
        compiler_params=pltpu.CompilerParams(
            dimension_semantics=("parallel", "arbitrary"),
            vmem_limit_bytes=vmem_limit,
        ),
    )(nlt, y_pred, labels, unsup3, unsup3)

    # Tiny host-side epilogue: combine per-part raw sums into the three losses.
    ce_sum = jnp.sum(out[:, 0, 0])
    n_sel = jnp.sum(out[:, 1, 0])
    kl_sum = jnp.sum(out[:, 2, 0])

    loss_sup = jnp.where(n_sel > 0.0, ce_sum / jnp.maximum(n_sel, 1.0), 0.0)
    inv_unsup = (1.0 / U) if U > 0 else 0.0      # guards the unsup == 0 case
    loss_unsup = kl_sum * jnp.float32(inv_unsup)
    total = loss_sup + loss_unsup
    if return_all_loss:
        return total, loss_sup, loss_unsup
    return total


def _uda_loss_ref(y_pred, y_true_sup, threshold=None):
    """Pure-JAX reference mirroring UDALoss.forward (f32 math)."""
    sup = y_true_sup.shape[0]
    unsup = (y_pred.shape[0] - sup) // 2
    idx = y_true_sup[:, None].astype(jnp.int32)
    logits_sup = y_pred[:sup].astype(jnp.float32)
    logp = jax.nn.log_softmax(logits_sup, axis=-1)
    ce_rows = -jnp.take_along_axis(logp, idx, axis=1)[:, 0]
    if threshold is None:
        loss_sup = ce_rows.mean()
    else:
        probs = jnp.take_along_axis(jax.nn.softmax(logits_sup, axis=-1), idx, axis=1)[:, 0]
        sel = (probs < threshold).astype(jnp.float32)
        n = sel.sum()
        loss_sup = jnp.where(n > 0, (ce_rows * sel).sum() / jnp.maximum(n, 1.0), 0.0)
    target = jax.nn.softmax(y_pred[sup:sup + unsup].astype(jnp.float32), axis=-1)
    log_pred = jax.nn.log_softmax(y_pred[sup + unsup:].astype(jnp.float32), axis=-1)
    loss_unsup = jnp.sum(target * (jnp.log(target) - log_pred)) / unsup
    return loss_sup + loss_unsup, loss_sup, loss_unsup


if __name__ == "__main__":
    key = jax.random.PRNGKey(0)
    k1, k2, k3, k4 = jax.random.split(key, 4)

    # --- case 1: small f32 batch, no TSA (plain mean CE + batchmean KL) -------
    S, U, L = 8, 4, 32
    y_pred = jax.random.normal(k1, (S + 2 * U, L), dtype=jnp.float32)
    y_true = jax.random.randint(k2, (S,), 0, L, dtype=jnp.int32)

    total, loss_sup, loss_unsup = uda_loss(y_pred, y_true, 100, 1000)
    jax.block_until_ready(total)
    rt, rs, ru = _uda_loss_ref(y_pred, y_true)
    assert jnp.allclose(loss_sup, rs, rtol=5e-3, atol=5e-3), (loss_sup, rs)
    assert jnp.allclose(loss_unsup, ru, rtol=5e-3, atol=5e-3), (loss_unsup, ru)
    assert jnp.allclose(total, rt, rtol=5e-3, atol=5e-3), (total, rt)

    # --- case 2: multi-tile grid (forced tiny row tiles) + TSA linear schedule -
    S2, U2, L2 = 40, 24, 32
    y_pred2 = jax.random.normal(k3, (S2 + 2 * U2, L2), dtype=jnp.float32)
    y_true2 = jax.random.randint(k4, (S2,), 0, L2, dtype=jnp.int32)
    gs, ts = 100, 1000
    t2 = uda_loss(y_pred2, y_true2, gs, ts, tsa_schedule="linear_schedule",
                  return_all_loss=False, row_tile_cap=16)
    jax.block_until_ready(t2)
    thr = (gs / ts) * (1.0 - 0.0) + 0.0
    rt2, _, _ = _uda_loss_ref(y_pred2, y_true2, threshold=thr)
    assert jnp.allclose(t2, rt2, rtol=5e-3, atol=5e-3), (t2, rt2)

    # --- case 3: native bf16 inputs (no host-side f32 upcast) -----------------
    y_pred_bf = y_pred.astype(jnp.bfloat16)
    tb, _, _ = uda_loss(y_pred_bf, y_true, 100, 1000)
    jax.block_until_ready(tb)
    rtb, _, _ = _uda_loss_ref(y_pred_bf.astype(jnp.float32), y_true)
    assert jnp.allclose(tb, rtb, rtol=1e-2, atol=1e-2), (tb, rtb)

    print("KERNEL_OK")
</pallas_src>

<mosaic_0001>
module attributes {stable_mosaic.version = 11 : i64} {
  func.func @kernel(%arg0: i32, %arg1: i32, %arg2: memref<1xf32, #tpu.memory_space<smem>>, %arg3: memref<8x32xf32, #tpu.memory_space<vmem>>, %arg4: memref<8x1xi32, #tpu.memory_space<vmem>>, %arg5: memref<1x4x32xf32, #tpu.memory_space<vmem>>, %arg6: memref<1x4x32xf32, #tpu.memory_space<vmem>>, %arg7: memref<1x8x128xf32, #tpu.memory_space<vmem>>, %arg8: memref<8x1xf32, #tpu.memory_space<vmem>>, %arg9: memref<8x1xf32, #tpu.memory_space<vmem>>, %arg10: memref<4x1xf32, #tpu.memory_space<vmem>>) attributes {dimension_semantics = [#tpu.dimension_semantics<parallel>, #tpu.dimension_semantics<arbitrary>], iteration_bounds = array<i64: 1, 1>, scalar_prefetch = 0 : i64, scratch_operands = 3 : i64, tpu.core_type = #tpu.core_type<tc>, window_params = [{transform_indices = @transform_0, window_bounds = array<i64: 1>}, {transform_indices = @transform_1, window_bounds = array<i64: 8, 32>}, {transform_indices = @transform_2, window_bounds = array<i64: 8, 1>}, {transform_indices = @transform_3, window_bounds = array<i64: 1, 4, 32>}, {transform_indices = @transform_4, window_bounds = array<i64: 1, 4, 32>}, {transform_indices = @transform_5, window_bounds = array<i64: 1, 8, 128>}]} {
    %c1_i32 = arith.constant 1 : i32
    %0 = arith.muli %arg1, %c1_i32 : i32
    %1 = arith.addi %0, %arg0 : i32
    %c0_i32 = arith.constant 0 : i32
    %2 = arith.cmpi eq, %arg1, %c0_i32 : i32
    %3 = arith.extui %2 : i1 to i32
    %c0_i32_0 = arith.constant 0 : i32
    %4 = arith.cmpi ne, %3, %c0_i32_0 : i32
    scf.if %4 {
      %cst = arith.constant 0.000000e+00 : f32
      %14 = vector.broadcast %cst : f32 to vector<8x1xf32>
      %c0 = arith.constant 0 : index
      %c0_7 = arith.constant 0 : index
      %15 = vector.load %arg8[%c0, %c0_7] : memref<8x1xf32, #tpu.memory_space<vmem>>, vector<8x1xf32>
      tpu.vector_store %arg8[%c0, %c0_7], %14 {strides = array<i32>} : memref<8x1xf32, #tpu.memory_space<vmem>>, vector<8x1xf32>,
      %cst_8 = arith.constant 0.000000e+00 : f32
      %16 = vector.broadcast %cst_8 : f32 to vector<8x1xf32>
      %c0_9 = arith.constant 0 : index
      %c0_10 = arith.constant 0 : index
      %17 = vector.load %arg9[%c0_9, %c0_10] : memref<8x1xf32, #tpu.memory_space<vmem>>, vector<8x1xf32>
      tpu.vector_store %arg9[%c0_9, %c0_10], %16 {strides = array<i32>} : memref<8x1xf32, #tpu.memory_space<vmem>>, vector<8x1xf32>,
      %cst_11 = arith.constant 0.000000e+00 : f32
      %18 = vector.broadcast %cst_11 : f32 to vector<4x1xf32>
      %c0_12 = arith.constant 0 : index
      %c0_13 = arith.constant 0 : index
      %19 = vector.load %arg10[%c0_12, %c0_13] : memref<4x1xf32, #tpu.memory_space<vmem>>, vector<4x1xf32>
      tpu.vector_store %arg10[%c0_12, %c0_13], %18 {strides = array<i32>} : memref<4x1xf32, #tpu.memory_space<vmem>>, vector<4x1xf32>,
    } else {
    }
    %c1_i32_1 = arith.constant 1 : i32
    %5 = arith.cmpi slt, %1, %c1_i32_1 : i32
    %6 = arith.extui %5 : i1 to i32
    %c0_i32_2 = arith.constant 0 : i32
    %7 = arith.cmpi ne, %6, %c0_i32_2 : i32
    scf.if %7 {
      %c0 = arith.constant 0 : index
      %c0_7 = arith.constant 0 : index
      %14 = vector.load %arg3[%c0, %c0_7] : memref<8x32xf32, #tpu.memory_space<vmem>>, vector<8x32xf32>
      %cst = arith.constant dense<0xFF800000> : vector<8xf32>
      %15 = vector.multi_reduction <maximumf>, %14, %cst [1] : vector<8x32xf32> to vector<8xf32>
      %16 = vector.shape_cast %15 : vector<8xf32> to vector<8x1xf32>
      %17 = vector.broadcast %16 : vector<8x1xf32> to vector<8x32xf32>
      %18 = arith.subf %14, %17 : vector<8x32xf32>
      %19 = math.exp %18 : vector<8x32xf32>
      %cst_8 = arith.constant dense<0.000000e+00> : vector<8xf32>
      %20 = vector.multi_reduction <add>, %19, %cst_8 [1] : vector<8x32xf32> to vector<8xf32>
      %21 = vector.shape_cast %20 : vector<8xf32> to vector<8x1xf32>
      %c0_9 = arith.constant 0 : index
      %c0_10 = arith.constant 0 : index
      %22 = vector.load %arg4[%c0_9, %c0_10] : memref<8x1xi32, #tpu.memory_space<vmem>>, vector<8x1xi32>
      %23 = tpu.iota {dimensions = array<i32: 1>} : vector<8x32xi32>
      %24 = vector.broadcast %22 : vector<8x1xi32> to vector<8x32xi32>
      %25 = arith.cmpi eq, %23, %24 : vector<8x32xi32>
      %26 = arith.extui %25 : vector<8x32xi1> to vector<8x32xi32>
      %27 = arith.sitofp %26 : vector<8x32xi32> to vector<8x32xf32>
      %28 = arith.mulf %18, %27 : vector<8x32xf32>
      %cst_11 = arith.constant dense<0.000000e+00> : vector<8xf32>
      %29 = vector.multi_reduction <add>, %28, %cst_11 [1] : vector<8x32xf32> to vector<8xf32>
      %30 = vector.shape_cast %29 : vector<8xf32> to vector<8x1xf32>
      %31 = math.log %21 : vector<8x1xf32>
      %32 = arith.subf %31, %30 : vector<8x1xf32>
      %33 = tpu.iota {dimensions = array<i32: 0>} : vector<8x1xi32>
      %c8_i32 = arith.constant 8 : i32
      %34 = arith.muli %1, %c8_i32 : i32
      %35 = vector.broadcast %34 : i32 to vector<8x1xi32>
      %36 = arith.addi %33, %35 : vector<8x1xi32>
      %c8_i32_12 = arith.constant 8 : i32
      %37 = vector.broadcast %c8_i32_12 : i32 to vector<8x1xi32>
      %38 = arith.cmpi slt, %36, %37 : vector<8x1xi32>
      %c0_13 = arith.constant 0 : index
      %39 = memref.load %arg2[%c0_13] : memref<1xf32, #tpu.memory_space<smem>>
      %40 = vector.broadcast %39 : f32 to vector<8x1xf32>
      %41 = arith.cmpf ogt, %32, %40 : vector<8x1xf32>
      %42 = arith.andi %41, %38 : vector<8x1xi1>
      %c0_14 = arith.constant 0 : index
      %c0_15 = arith.constant 0 : index
      %43 = vector.load %arg8[%c0_14, %c0_15] : memref<8x1xf32, #tpu.memory_space<vmem>>, vector<8x1xf32>
      %cst_16 = arith.constant 0.000000e+00 : f32
      %44 = vector.broadcast %cst_16 : f32 to vector<8x1xf32>
      %45 = arith.select %42, %32, %44 : vector<8x1xi1>, vector<8x1xf32>
      %46 = arith.addf %43, %45 : vector<8x1xf32>
      %c0_17 = arith.constant 0 : index
      %c0_18 = arith.constant 0 : index
      %47 = vector.load %arg8[%c0_17, %c0_18] : memref<8x1xf32, #tpu.memory_space<vmem>>, vector<8x1xf32>
      tpu.vector_store %arg8[%c0_17, %c0_18], %46 {strides = array<i32>} : memref<8x1xf32, #tpu.memory_space<vmem>>, vector<8x1xf32>,
      %c0_19 = arith.constant 0 : index
      %c0_20 = arith.constant 0 : index
      %48 = vector.load %arg9[%c0_19, %c0_20] : memref<8x1xf32, #tpu.memory_space<vmem>>, vector<8x1xf32>
      %cst_21 = arith.constant 1.000000e+00 : f32
      %cst_22 = arith.constant 0.000000e+00 : f32
      %49 = vector.broadcast %cst_21 : f32 to vector<8x1xf32>
      %50 = vector.broadcast %cst_22 : f32 to vector<8x1xf32>
      %51 = arith.select %42, %49, %50 : vector<8x1xi1>, vector<8x1xf32>
      %52 = arith.addf %48, %51 : vector<8x1xf32>
      %c0_23 = arith.constant 0 : index
      %c0_24 = arith.constant 0 : index
      %53 = vector.load %arg9[%c0_23, %c0_24] : memref<8x1xf32, #tpu.memory_space<vmem>>, vector<8x1xf32>
      tpu.vector_store %arg9[%c0_23, %c0_24], %52 {strides = array<i32>} : memref<8x1xf32, #tpu.memory_space<vmem>>, vector<8x1xf32>,
    } else {
    }
    %c1_i32_3 = arith.constant 1 : i32
    %8 = arith.cmpi slt, %1, %c1_i32_3 : i32
    %9 = arith.extui %8 : i1 to i32
    %c0_i32_4 = arith.constant 0 : i32
    %10 = arith.cmpi ne, %9, %c0_i32_4 : i32
    scf.if %10 {
      %c0 = arith.constant 0 : index
      %c0_7 = arith.constant 0 : index
      %c0_8 = arith.constant 0 : index
      %14 = vector.load %arg5[%c0, %c0_7, %c0_8] : memref<1x4x32xf32, #tpu.memory_space<vmem>>, vector<1x4x32xf32>
      %15 = vector.shape_cast %14 : vector<1x4x32xf32> to vector<4x32xf32>
      %c0_9 = arith.constant 0 : index
      %c0_10 = arith.constant 0 : index
      %c0_11 = arith.constant 0 : index
      %16 = vector.load %arg6[%c0_9, %c0_10, %c0_11] : memref<1x4x32xf32, #tpu.memory_space<vmem>>, vector<1x4x32xf32>
      %17 = vector.shape_cast %16 : vector<1x4x32xf32> to vector<4x32xf32>
      %cst = arith.constant dense<0xFF800000> : vector<4xf32>
      %18 = vector.multi_reduction <maximumf>, %15, %cst [1] : vector<4x32xf32> to vector<4xf32>
      %19 = vector.shape_cast %18 : vector<4xf32> to vector<4x1xf32>
      %cst_12 = arith.constant dense<0xFF800000> : vector<4xf32>
      %20 = vector.multi_reduction <maximumf>, %17, %cst_12 [1] : vector<4x32xf32> to vector<4xf32>
      %21 = vector.shape_cast %20 : vector<4xf32> to vector<4x1xf32>
      %22 = vector.broadcast %19 : vector<4x1xf32> to vector<4x32xf32>
      %23 = arith.subf %15, %22 : vector<4x32xf32>
      %24 = vector.broadcast %21 : vector<4x1xf32> to vector<4x32xf32>
      %25 = arith.subf %17, %24 : vector<4x32xf32>
      %26 = math.exp %23 : vector<4x32xf32>
      %cst_13 = arith.constant dense<0.000000e+00> : vector<4xf32>
      %27 = vector.multi_reduction <add>, %26, %cst_13 [1] : vector<4x32xf32> to vector<4xf32>
      %28 = vector.shape_cast %27 : vector<4xf32> to vector<4x1xf32>
      %29 = math.exp %25 : vector<4x32xf32>
      %cst_14 = arith.constant dense<0.000000e+00> : vector<4xf32>
      %30 = vector.multi_reduction <add>, %29, %cst_14 [1] : vector<4x32xf32> to vector<4xf32>
      %31 = vector.shape_cast %30 : vector<4xf32> to vector<4x1xf32>
      %32 = arith.subf %23, %25 : vector<4x32xf32>
      %33 = arith.mulf %26, %32 : vector<4x32xf32>
      %cst_15 = arith.constant dense<0.000000e+00> : vector<4xf32>
      %34 = vector.multi_reduction <add>, %33, %cst_15 [1] : vector<4x32xf32> to vector<4xf32>
      %35 = vector.shape_cast %34 : vector<4xf32> to vector<4x1xf32>
      %36 = arith.divf %35, %28 : vector<4x1xf32>
      %37 = math.log %31 : vector<4x1xf32>
      %38 = math.log %28 : vector<4x1xf32>
      %39 = arith.subf %37, %38 : vector<4x1xf32>
      %40 = arith.addf %36, %39 : vector<4x1xf32>
      %41 = tpu.iota {dimensions = array<i32: 0>} : vector<4x1xi32>
      %c4_i32 = arith.constant 4 : i32
      %42 = arith.muli %1, %c4_i32 : i32
      %43 = vector.broadcast %42 : i32 to vector<4x1xi32>
      %44 = arith.addi %41, %43 : vector<4x1xi32>
      %c4_i32_16 = arith.constant 4 : i32
      %45 = vector.broadcast %c4_i32_16 : i32 to vector<4x1xi32>
      %46 = arith.cmpi slt, %44, %45 : vector<4x1xi32>
      %c0_17 = arith.constant 0 : index
      %c0_18 = arith.constant 0 : index
      %47 = vector.load %arg10[%c0_17, %c0_18] : memref<4x1xf32, #tpu.memory_space<vmem>>, vector<4x1xf32>
      %cst_19 = arith.constant 0.000000e+00 : f32
      %48 = vector.broadcast %cst_19 : f32 to vector<4x1xf32>
      %49 = arith.select %46, %40, %48 : vector<4x1xi1>, vector<4x1xf32>
      %50 = arith.addf %47, %49 : vector<4x1xf32>
      %c0_20 = arith.constant 0 : index
      %c0_21 = arith.constant 0 : index
      %51 = vector.load %arg10[%c0_20, %c0_21] : memref<4x1xf32, #tpu.memory_space<vmem>>, vector<4x1xf32>
      tpu.vector_store %arg10[%c0_20, %c0_21], %50 {strides = array<i32>} : memref<4x1xf32, #tpu.memory_space<vmem>>, vector<4x1xf32>,
    } else {
    }
    %c0_i32_5 = arith.constant 0 : i32
    %11 = arith.cmpi eq, %arg1, %c0_i32_5 : i32
    %12 = arith.extui %11 : i1 to i32
    %c0_i32_6 = arith.constant 0 : i32
    %13 = arith.cmpi ne, %12, %c0_i32_6 : i32
    scf.if %13 {
      %c0 = arith.constant 0 : index
      %c0_7 = arith.constant 0 : index
      %14 = vector.load %arg8[%c0, %c0_7] : memref<8x1xf32, #tpu.memory_space<vmem>>, vector<8x1xf32>
      %15 = vector.shape_cast %14 : vector<8x1xf32> to vector<1x8x1xf32>
      %cst = arith.constant dense<0.000000e+00> : vector<1xf32>
      %16 = vector.multi_reduction <add>, %15, %cst [1, 2] : vector<1x8x1xf32> to vector<1xf32>
      %17 = vector.shape_cast %16 : vector<1xf32> to vector<1x1x1xf32>
      %18 = vector.extract %17[0, 0, 0] : f32 from vector<1x1x1xf32>
      %c0_8 = arith.constant 0 : index
      %c0_9 = arith.constant 0 : index
      %19 = vector.load %arg9[%c0_8, %c0_9] : memref<8x1xf32, #tpu.memory_space<vmem>>, vector<8x1xf32>
      %20 = vector.shape_cast %19 : vector<8x1xf32> to vector<1x8x1xf32>
      %cst_10 = arith.constant dense<0.000000e+00> : vector<1xf32>
      %21 = vector.multi_reduction <add>, %20, %cst_10 [1, 2] : vector<1x8x1xf32> to vector<1xf32>
      %22 = vector.shape_cast %21 : vector<1xf32> to vector<1x1x1xf32>
      %23 = vector.extract %22[0, 0, 0] : f32 from vector<1x1x1xf32>
      %c0_11 = arith.constant 0 : index
      %c0_12 = arith.constant 0 : index
      %24 = vector.load %arg10[%c0_11, %c0_12] : memref<4x1xf32, #tpu.memory_space<vmem>>, vector<4x1xf32>
      %25 = vector.shape_cast %24 : vector<4x1xf32> to vector<1x4x1xf32>
      %cst_13 = arith.constant dense<0.000000e+00> : vector<1xf32>
      %26 = vector.multi_reduction <add>, %25, %cst_13 [1, 2] : vector<1x4x1xf32> to vector<1xf32>
      %27 = vector.shape_cast %26 : vector<1xf32> to vector<1x1x1xf32>
      %28 = vector.extract %27[0, 0, 0] : f32 from vector<1x1x1xf32>
      %29 = tpu.iota {dimensions = array<i32: 0>} : vector<8x128xi32>
      %c0_i32_14 = arith.constant 0 : i32
      %30 = vector.broadcast %c0_i32_14 : i32 to vector<8x128xi32>
      %31 = arith.cmpi eq, %29, %30 : vector<8x128xi32>
      %c1_i32_15 = arith.constant 1 : i32
      %32 = vector.broadcast %c1_i32_15 : i32 to vector<8x128xi32>
      %33 = arith.cmpi eq, %29, %32 : vector<8x128xi32>
      %c2_i32 = arith.constant 2 : i32
      %34 = vector.broadcast %c2_i32 : i32 to vector<8x128xi32>
      %35 = arith.cmpi eq, %29, %34 : vector<8x128xi32>
      %cst_16 = arith.constant 0.000000e+00 : f32
      %36 = vector.broadcast %28 : f32 to vector<8x128xf32>
      %37 = vector.broadcast %cst_16 : f32 to vector<8x128xf32>
      %38 = arith.select %35, %36, %37 : vector<8x128xi1>, vector<8x128xf32>
      %39 = vector.broadcast %23 : f32 to vector<8x128xf32>
      %40 = arith.select %33, %39, %38 : vector<8x128xi1>, vector<8x128xf32>
      %41 = vector.broadcast %18 : f32 to vector<8x128xf32>
      %42 = arith.select %31, %41, %40 : vector<8x128xi1>, vector<8x128xf32>
      %c0_17 = arith.constant 0 : index
      %c0_18 = arith.constant 0 : index
      %c0_19 = arith.constant 0 : index
      %43 = vector.load %arg7[%c0_17, %c0_18, %c0_19] : memref<1x8x128xf32, #tpu.memory_space<vmem>>, vector<1x8x128xf32>
      %44 = vector.shape_cast %43 : vector<1x8x128xf32> to vector<8x128xf32>
      %45 = vector.shape_cast %42 : vector<8x128xf32> to vector<1x8x128xf32>
      tpu.vector_store %arg7[%c0_17, %c0_18, %c0_19], %45 {strides = array<i32>} : memref<1x8x128xf32, #tpu.memory_space<vmem>>, vector<1x8x128xf32>,
    } else {
    }
    return
  }
  func.func @transform_0(%arg0: i32, %arg1: i32) -> i32 {
    %c0_i32 = arith.constant 0 : i32
    %c0_i32_0 = arith.constant 0 : i32
    return %c0_i32 : i32
  }
  func.func @transform_1(%arg0: i32, %arg1: i32) -> (i32, i32) {
    %c1_i32 = arith.constant 1 : i32
    %0 = arith.muli %arg1, %c1_i32 : i32
    %1 = arith.addi %0, %arg0 : i32
    %c0_i32 = arith.constant 0 : i32
    %2 = arith.minsi %1, %c0_i32 : i32
    %c0_i32_0 = arith.constant 0 : i32
    %c0_i32_1 = arith.constant 0 : i32
    return %2, %c0_i32_0 : i32, i32
  }
  func.func @transform_2(%arg0: i32, %arg1: i32) -> (i32, i32) {
    %c1_i32 = arith.constant 1 : i32
    %0 = arith.muli %arg1, %c1_i32 : i32
    %1 = arith.addi %0, %arg0 : i32
    %c0_i32 = arith.constant 0 : i32
    %2 = arith.minsi %1, %c0_i32 : i32
    %c0_i32_0 = arith.constant 0 : i32
    %c0_i32_1 = arith.constant 0 : i32
    return %2, %c0_i32_0 : i32, i32
  }
  func.func @transform_3(%arg0: i32, %arg1: i32) -> (i32, i32, i32) {
    %c1_i32 = arith.constant 1 : i32
    %0 = arith.muli %arg1, %c1_i32 : i32
    %1 = arith.addi %0, %arg0 : i32
    %c0_i32 = arith.constant 0 : i32
    %2 = arith.minsi %1, %c0_i32 : i32
    %c0_i32_0 = arith.constant 0 : i32
    %c0_i32_1 = arith.constant 0 : i32
    %c0_i32_2 = arith.constant 0 : i32
    return %c0_i32_0, %2, %c0_i32_1 : i32, i32, i32
  }
  func.func @transform_4(%arg0: i32, %arg1: i32) -> (i32, i32, i32) {
    %c1_i32 = arith.constant 1 : i32
    %0 = arith.muli %arg1, %c1_i32 : i32
    %1 = arith.addi %0, %arg0 : i32
    %c0_i32 = arith.constant 0 : i32
    %2 = arith.minsi %1, %c0_i32 : i32
    %c1_i32_0 = arith.constant 1 : i32
    %c0_i32_1 = arith.constant 0 : i32
    %c0_i32_2 = arith.constant 0 : i32
    return %c1_i32_0, %2, %c0_i32_1 : i32, i32, i32
  }
  func.func @transform_5(%arg0: i32, %arg1: i32) -> (i32, i32, i32) {
    %c0_i32 = arith.constant 0 : i32
    %c0_i32_0 = arith.constant 0 : i32
    %c0_i32_1 = arith.constant 0 : i32
    return %arg0, %c0_i32, %c0_i32_0 : i32, i32, i32
  }
}

</mosaic_0001>

<bundles_post_ra>
// kernel: tpu_custom_call.1
= control target key start
LH: loop header
LB: loop body
LE: loop exit
PB: predicated region body
PF: predicated region fallthrough
CT: control target
= control target key end

     0   :  { %11 = vsyncpa [#allocation7], 0  ;;  %s489_s0 = inlined_call_operand.<no memory space> [shape: f32[1], index: 0, kind: input, shape index: {}]   ;;  %s490_s1 = inlined_call_operand.hbm [shape: f32[16,32], index: 1, kind: input, shape index: {}]   ;;  %s491_s2 = inlined_call_operand.vmem [shape: s32[8,1], index: 2, kind: input, shape index: {}]   ;;  %s492_s3 = inlined_call_operand.vmem [shape: f32[2,4,32], index: 3, kind: input, shape index: {}]   ;;  %s493_s4 = inlined_call_operand.vmem [shape: f32[2,4,32], index: 4, kind: input, shape index: {}]   ;;  %s494_s5 = inlined_call_operand.hbm [shape: f32[1,8,128], index: 5, kind: output, shape index: {}]  }
   0x1   :  { %12 = vsyncpa [#allocation8], 0  ;;  %s393_s18 = smov [#allocation6]   ;;  %s345_s22 = scalar_lea.hbm %s490_s1, 128 }
   0x2   :  { %s26_s19 = sshll.u32 %s393_s18, 4  ;;  %p346_p0 = scmp.ne.s32.totalorder %s490_s1, %s345_s22  ;;  %s27_s19 = int_to_ptr.vmem [resolvable:$true] %s26_s19 }
   0x3   :  { %s347_s27 = scalar_lea.hbm %s490_s1, 256  ;;  %p349_p2 = scmp.lt.u32.totalorder %s345_s22, %s490_s1 }
   0x4   :  { %p348_p1 = scmp.lt.u32.totalorder %s347_s27, %s345_s22 }
   0x6   :  { %p350_p3 = por %p349_p2, %p348_p1 }
   0x8   :  { %p351_p4 = pnand %p350_p3, %p346_p0 }
   0xa   :  { %354 = shalt.err (!%p351_p4)
}
   0xb   :  { %s355_s30 = scalar_lea.vmem %s27_s19, 128  ;;  %p360_p6 = scmp.lt.s32.totalorder %s27_s19, %s27_s19 }
   0xc   :  { %p356_p5 = scmp.ne.s32.totalorder %s27_s19, %s355_s30  ;;  %p361_p7 = scmp.lt.s32.totalorder %s355_s30, %s355_s30 }
   0xe   :  { %p362_p8 = por %p361_p7, %p360_p6 }
  0x10   :  { %p363_p9 = pnand %p362_p8, %p356_p5 }
  0x12   :  { %366 = shalt.err (!%p363_p9)
}
  0x13   :  { %29 = dma.hbm_to_vmem [thread:$0]  %s490_s1, 128, %s27_s19, [#allocation7]  }
  0x14   :  { %389 = dma.done.wait [#allocation7], 128  }
  0x15   :  { %390 = vsyncadd [#allocation7], 4294967168  ;;  %v394_v0 = vmov 0   ;;  %vm188_vm0 = vcmask 257024   ;;  %vm141_vm1 = vcmask 261120   ;;  %v140_v3 = vld [vmem:[#allocation6] sm:$0xff]  ;;  %v152_v8 = vlaneseq }
  0x16   :  { %329 = vset.pattern.permute.xlu1 %v394_v0  ;;  %330 = vset.pattern.permute.xlu0 %v394_v0  ;;  %v186_v1 = vld [vmem:[%s492_s3] sm:$0xf]  ;;  %v318_v2 = vld [vmem:[%s493_s4 + $0x4] sm:$0xf]  ;;  %v142_v5 = vsel %vm141_vm1, %v140_v3, -inf  ;;  %v395_v19 = vmov 0.0   ;;  %v174_v50 = vstv %s489_s0 }
  0x17   :  { %v189_v4 = vsel %vm188_vm0, %v186_v1, -inf  ;;  %143 = vmax.xlane.f32.xlu1 %v142_v5  ;;  %v192_v6 = vsel %vm188_vm0, %v318_v2, -inf  ;;  %v151_v7 = vld [vmem:[%s491_s2] sm:$0xff]  ;;  %v153_v13 = vand.u32 127, %v152_v8  ;;  %vm134_vm3 = vcmask 3072   ;;  %s396_s14 = smov [#allocation9]  }
  0x18   :  { %190 = vmax.xlane.f32.xlu0 %v189_v4  ;;  %vm131_vm4 = vcmask 7168   ;;  %135 = vst.msk [vmem:[#allocation4] sm:$0xf] %vm134_vm3, %v395_v19  ;;  %v462_v39 = vshrl.u32 %v152_v8, 7  ;;  %s285_s15 = sshll.u32 %s396_s14, 4  ;;  %s286_s15 = int_to_ptr.vmem [resolvable:$true] %s285_s15 }
  0x19   :  { %132 = vst.msk [vmem:[#allocation2] sm:$0xff] %vm131_vm4, %v395_v19  ;;  %133 = vst.msk [vmem:[#allocation3] sm:$0xff] %vm131_vm4, %v395_v19  ;;  %s367_s16 = scalar_lea.vmem %s286_s15, 128  ;;  %p372_p11 = scmp.lt.s32.totalorder %s286_s15, %s286_s15 }
  0x1a   :  { %vm223_vm5 = vcmp.lt.s32.totalorder %v462_v39, 4  ;;  %vm271_vm7 = vcmp.eq.s32.totalorder %v462_v39, 2  ;;  %vm270_vm8 = vcmp.eq.s32.totalorder %v462_v39, 1  ;;  %vm269_vm9 = vcmp.eq.s32.totalorder %v462_v39, 0  ;;  %p368_p10 = scmp.ne.s32.totalorder %s286_s15, %s367_s16  ;;  %p373_p12 = scmp.lt.s32.totalorder %s367_s16, %s367_s16 }
  0x1c   :  { %193 = vmax.xlane.f32.xlu0 %v192_v6  ;;  %p374_p13 = por %p373_p12, %p372_p11 }
  0x1e   :  { %p375_p0 = pnand %p374_p13, %p368_p10 }
  0x1f   :  { %v224_v48 = vld [vmem:[#allocation4] sm:$0xf] }
  0x20   :  { %v177_v53 = vld [vmem:[#allocation2] sm:$0xff]  ;;  %v182_v54 = vld [vmem:[#allocation3] sm:$0xff] }
  0x28   :  { %155 = vperm.xlu1 %329, %v151_v7  }
  0xa4   :  { %v144_v10 = vpop.xlane.xlu1 %143 }
  0xa5   :  { %v191_v9 = vpop.xlane.xlu0 %190  ;;  %v145_v12 = vsub.f32 %v140_v3, %v144_v10 }
  0xa6   :  { %v195_v11 = vsub.f32 %v186_v1, %v191_v9 }
  0xa7   :  { %v146_v16 = vmul.f32 1.442695, %v145_v12 }
  0xa8   :  { %v197_v14 = vmul.f32 1.442695, %v195_v11  ;;  %v156_v17 = vpop.permute.xlu1 %155 }
  0xa9   :  { %v194_v15 = vpop.xlane.xlu0 %193  ;;  %vm157_vm2 = vcmp.eq.s32.totalorder %v153_v13, %v156_v17 }
  0xaa   :  { %331 = vpow2.f32 %v197_v14  ;;  %v196_v18 = vsub.f32 %v318_v2, %v194_v15  ;;  %v317_v20 = vsel %vm157_vm2, 1.0, %v395_v19 }
  0xab   :  { %v160_v22 = vmul.f32 %v317_v20, %v145_v12  ;;  %333 = vpow2.f32 %v146_v16 }
  0xac   :  { %v202_v21 = vmul.f32 1.442695, %v196_v18  ;;  %v207_v29 = vsub.f32 %v195_v11, %v196_v18 }
  0xad   :  { %v161_v23 = vsel %vm141_vm1, %v160_v22, 0.0 }
  0xae   :  { %335 = vpow2.f32 %v202_v21  ;;  %162 = vadd.xlane.f32.xlu1 %v161_v23 }
  0xb4   :  { %v332_v24 = vpop.eup %331 }
  0xb5   :  { %v199_v25 = vsel %vm188_vm0, %v332_v24, 0.0  ;;  %v334_v26 = vpop.eup %333  ;;  %v208_v31 = vmul.f32 %v332_v24, %v207_v29 }
  0xb6   :  { %200 = vadd.xlane.f32.xlu0 %v199_v25  ;;  %v148_v30 = vsel %vm141_vm1, %v334_v26, 0.0 }
  0xb7   :  { %v209_v32 = vsel %vm188_vm0, %v208_v31, 0.0 }
  0xb8   :  { %v336_v27 = vpop.eup %335 }
  0xb9   :  { %v204_v28 = vsel %vm188_vm0, %v336_v27, 0.0 }
  0xba   :  { %205 = vadd.xlane.f32.xlu0 %v204_v28 }
  0xbe   :  { %149 = vadd.xlane.f32.xlu0 %v148_v30 }
  0xc2   :  { %210 = vadd.xlane.f32.xlu0 %v209_v32 }
 0x13b   :  { %v163_v49 = vpop.xlane.xlu1 %162 }
 0x143   :  { %v201_v33 = vpop.xlane.xlu0 %200 }
 0x144   :  { %337 = vlog2.f32 %v201_v33 }
 0x145   :  { %339 = vrcp.f32 %v201_v33 }
 0x147   :  { %v206_v34 = vpop.xlane.xlu0 %205 }
 0x148   :  { %341 = vlog2.f32 %v206_v34 }
 0x14b   :  { %v150_v35 = vpop.xlane.xlu0 %149 }
 0x14c   :  { %343 = vlog2.f32 %v150_v35 }
 0x14e   :  { %v338_v36 = vpop.eup %337 }
 0x14f   :  { %v340_v37 = vpop.eup %339  ;;  %v211_v40 = vpop.xlane.xlu0 %210  ;;  %v217_v41 = vmul.f32 0.6931472, %v338_v36 }
 0x150   :  { %v213_v44 = vmul.f32 %v340_v37, %v211_v40 }
 0x152   :  { %v342_v38 = vpop.eup %341 }
 0x153   :  { %v215_v42 = vmul.f32 0.6931472, %v342_v38 }
 0x155   :  { %v218_v43 = vsub.f32 %v215_v42, %v217_v41 }
 0x156   :  { %v344_v45 = vpop.eup %343 }
 0x157   :  { %v165_v46 = vmul.f32 0.6931472, %v344_v45  ;;  %v219_v47 = vadd.f32 %v218_v43, %v213_v44 }
 0x159   :  { %v166_v51 = vsub.f32 %v165_v46, %v163_v49  ;;  %v225_v52 = vsel %vm223_vm5, %v219_v47, 0.0 }
 0x15a   :  { %v226_v55 = vadd.f32 %v225_v52, %v224_v48 }
 0x15b   :  { %vm175_vm6 = vcmp.gt.f32.partialorder %v166_v51, %v174_v50 }
 0x15c   :  { %v178_v56 = vsel %vm175_vm6, %v166_v51, 0.0  ;;  %v183_v57 = vsel %vm175_vm6, 1.0, %v395_v19  ;;  %228 = vst.msk [vmem:[#allocation4] sm:$0xf] %vm134_vm3, %v226_v55 }
 0x15d   :  { %v179_v58 = vadd.f32 %v178_v56, %v177_v53  ;;  %v184_v59 = vadd.f32 %v183_v57, %v182_v54 }
 0x15f   :  { %181 = vst.msk [vmem:[#allocation2] sm:$0xff] %vm131_vm4, %v179_v58  ;;  %185 = vst.msk [vmem:[#allocation3] sm:$0xff] %vm131_vm4, %v184_v59 }
 0x163   :  { %v255_v0 = vld [vmem:[#allocation4] sm:$0xf] }
 0x164   :  { %v257_v1 = vsel %vm134_vm3, %v255_v0, 0.0 }
 0x166   :  { %v232_v60 = vld [vmem:[#allocation2] sm:$0xff]  ;;  %v244_v62 = vld [vmem:[#allocation3] sm:$0xff] }
 0x167   :  { %v234_v61 = vsel %vm131_vm4, %v232_v60, 0.0  ;;  %v245_v63 = vsel %vm131_vm4, %v244_v62, 0.0 }
 0x168   :  { %235 = vadd.xlane.f32.xlu0 %v234_v61 }
 0x16c   :  { %246 = vadd.xlane.f32.xlu0 %v245_v63 }
 0x170   :  { %258 = vadd.xlane.f32.xlu0 %v257_v1 }
 0x1f5   :  { %v236_v2 = vpop.xlane.xlu0 %235 }
 0x1f6   :  { %v237_v3 = vrot.slane %v236_v2, 4 }
 0x1f8   :  { %v238_v4 = vadd.f32 %v237_v3, %v236_v2 }
 0x1f9   :  { %v247_v5 = vpop.xlane.xlu0 %246 }
 0x1fa   :  { %v239_v6 = vrot.slane %v238_v4, 2  ;;  %v248_v7 = vrot.slane %v247_v5, 4 }
 0x1fc   :  { %v249_v8 = vadd.f32 %v248_v7, %v247_v5  ;;  %v240_v9 = vadd.f32 %v239_v6, %v238_v4 }
 0x1fd   :  { %v259_v10 = vpop.xlane.xlu0 %258 }
 0x1fe   :  { %v250_v11 = vrot.slane %v249_v8, 2  ;;  %v260_v12 = vrot.slane %v259_v10, 4  ;;  %v241_v13 = vrot.slane %v240_v9, 1 }
 0x200   :  { %v261_v14 = vadd.f32 %v260_v12, %v259_v10  ;;  %v242_v15 = vadd.f32 %v241_v13, %v240_v9  ;;  %v251_v16 = vadd.f32 %v250_v11, %v249_v8 }
 0x202   :  { %v262_v17 = vrot.slane %v261_v14, 2  ;;  %319 = vpush %v242_v15  ;;  %v252_v18 = vrot.slane %v251_v16, 1 }
 0x204   :  { %v263_v19 = vadd.f32 %v262_v17, %v261_v14  ;;  %v253_v20 = vadd.f32 %v252_v18, %v251_v16 }
 0x206   :  { %321 = vpush %v253_v20  ;;  %v264_v21 = vrot.slane %v263_v19, 1 }
 0x208   :  { %v265_v22 = vadd.f32 %v264_v21, %v263_v19 }
 0x20a   :  { %323 = vpush %v265_v22 }
 0x233   :  { %s320_s0 = spop %319 }
 0x234   :  { %v276_v26 = vstv %s320_s0 }
 0x237   :  { %s322_s4 = spop %321 }
 0x238   :  { %v274_v24 = vstv %s322_s4 }
 0x23b   :  { %s324_s13 = spop %323 }
 0x23c   :  { %v272_v23 = vstv %s324_s13 }
 0x23d   :  { %v273_v25 = vsel %vm271_vm7, %v272_v23, 0.0 }
 0x23e   :  { %v275_v27 = vsel %vm270_vm8, %v274_v24, %v273_v25 }
 0x23f   :  { %v277_v28 = vsel %vm269_vm9, %v276_v26, %v275_v27 }
 0x240   :  { %278 = vst [vmem:[#allocation9] sm:$0xff] %v277_v28 }
 0x241   :  { %378 = shalt.err (!%p375_p0)
}
 0x242   :  { %s379_s19 = scalar_lea.hbm %s494_s5, 128 }
 0x243   :  { %p380_p1 = scmp.ne.s32.totalorder %s494_s5, %s379_s19  ;;  %p383_p2 = scmp.lt.u32.totalorder %s379_s19, %s494_s5 }
 0x245   :  { %p385_p3 = pnand %p383_p2, %p380_p1 }
 0x247   :  { %388 = shalt.err (!%p385_p3)
}
 0x248   :  { %288 = dma.vmem_to_hbm [thread:$0]  %s286_s15, 128, %s494_s5, [#allocation8]  }
 0x249   :  { %391 = dma.done.wait [#allocation8], 128  }
 0x24a   :  { %392 = vsyncadd [#allocation8], 4294967168 }
 0x24b   :  { %292 = vsyncpa [#allocation7], 1 }
 0x24c   :  { %293 = vsyncpa [#allocation8], 1 }

</bundles_post_ra>
